<compile_context>
chip_gen: v7x
topology: tpu7x:2x2x1
jax: 0.10.0
libtpu: 0.0.40
codegen_flags: <defaults>
</compile_context>

<pallas_src>
import jax
import jax.numpy as jnp
from jax.experimental import pallas as pl
from jax.experimental.pallas import tpu as pltpu


def _cdiv(a: int, b: int) -> int:
    return (a + b - 1) // b


def _round_up(a: int, b: int) -> int:
    return _cdiv(a, b) * b


def _vmem_capacity_bytes() -> int:
    try:
        return int(pltpu.get_tpu_info().vmem_capacity_bytes)
    except Exception:
        return 64 * 1024 * 1024  # conservative: v7x per-TC VMEM


def _is_v7x() -> bool:
    try:
        return "v7" in jax.devices()[0].device_kind.lower()
    except Exception:
        return False


def _make_kernel(n_rows: int, tiles_per_group: int, tile_n: int):
    """Kernel accumulating sum_rows sum_classes(-t * log_softmax(p)) into (8, C)."""

    def kernel(pred_ref, tgt_ref, out_ref):
        gi = pl.program_id(0)   # group ("parallel") axis
        ti = pl.program_id(1)   # reduction ("arbitrary") axis

        @pl.when(ti == 0)
        def _():
            out_ref[...] = jnp.zeros_like(out_ref)

        p = pred_ref[...].astype(jnp.float32)   # (tile_n, C) f32
        t = tgt_ref[...]                        # keep input dtype; multiply promotes

        # Numerically-stable log-sum-exp along the class (lane) axis.
        m = jnp.max(p, axis=-1, keepdims=True)
        lse = m + jnp.log(jnp.sum(jnp.exp(p - m), axis=-1, keepdims=True))
        prod = t * (p - lse)                    # f32; CE contribution is -prod

        # Mask rows past the logical batch (ragged tail / unspecified OOB block
        # reads).  Mask the product so garbage (Inf/NaN) rows contribute 0.
        row_start = (gi * tiles_per_group + ti) * tile_n
        row_ids = row_start + jax.lax.broadcasted_iota(jnp.int32, (tile_n, 1), 0)
        prod = jnp.where(row_ids < n_rows, prod, 0.0)

        c = prod.shape[-1]
        # Sublane-only fold into the resident (8, C) accumulator block; the
        # negation is folded into the accumulate.
        out_ref[...] -= prod.reshape(tile_n // 8, 8, c).sum(axis=0)

    return kernel


def soft_target_cross_entropy(pred: jax.Array,
                              target: jax.Array,
                              reduction: str = "mean",
                              *,
                              max_tile_rows: int = 1024) -> jax.Array:
    """Equivalent of SoftTargetCrossEntropyLoss(reduction=...)(pred, target)."""
    assert pred.shape == target.shape and pred.ndim == 2
    n, c = pred.shape
    itemsize = max(jnp.dtype(pred.dtype).itemsize, jnp.dtype(target.dtype).itemsize)

    # ---- Generation-aware VMEM budget ------------------------------------
    vmem_cap = _vmem_capacity_bytes()
    vmem_limit = min(int(0.70 * vmem_cap), 96 * 1024 * 1024)
    budget_bytes = int(0.40 * vmem_cap)
    # Double-buffered inputs + f32 in-kernel working set (upcast p, exp temp,
    # prod) per row.
    bytes_per_row = 2 * 2 * c * itemsize + 3 * c * 4

    if 8 * bytes_per_row > budget_bytes:
        # TODO(synk): class-tiled / online-LSE (flash-style) variant for
        # vocab-scale C where even an 8-row tile exceeds the VMEM budget.
        raise NotImplementedError("class axis too large for single-pass kernel")

    # ---- Group split: only on v7x (2 TensorCores per chip) ----------------
    num_groups = 2 if (_is_v7x() and n > 8) else 1

    # ---- Row-tile sizing ---------------------------------------------------
    cap = (budget_bytes // bytes_per_row // 8) * 8
    tile_n = max(8, min(cap,
                        max_tile_rows,
                        1024,
                        _round_up(n, 8),
                        max(8, _round_up(_cdiv(n, num_groups * 4), 8))))

    n_tiles = _cdiv(n, tile_n)
    if num_groups > n_tiles:
        num_groups = 1
    tiles_per_group = _cdiv(n_tiles, num_groups)
    last_block = n_tiles - 1

    def row_block(gi, ti):
        # Clamp so a fully out-of-range tile (unbalanced group split) re-reads
        # the last valid block; its rows are masked to zero in the kernel.
        return (jnp.minimum(gi * tiles_per_group + ti, last_block), 0)

    kernel = _make_kernel(n, tiles_per_group, tile_n)

    partials = pl.pallas_call(
        kernel,
        out_shape=jax.ShapeDtypeStruct((num_groups, 8, c), jnp.float32),
        grid_spec=pltpu.PrefetchScalarGridSpec(
            num_scalar_prefetch=0,
            grid=(num_groups, tiles_per_group),
            in_specs=[
                pl.BlockSpec((tile_n, c), row_block),
                pl.BlockSpec((tile_n, c), row_block),
            ],
            # Output block index ignores the reduction axis -> stays resident
            # in VMEM as the (lane-dense) accumulator.
            out_specs=pl.BlockSpec((None, 8, c), lambda gi, ti: (gi, 0, 0)),
        ),
        compiler_params=pltpu.CompilerParams(
            dimension_semantics=("parallel", "arbitrary"),
            vmem_limit_bytes=vmem_limit,
        ),
        cost_estimate=pl.CostEstimate(
            flops=5 * n * c,
            transcendentals=n * (c + 1),
            bytes_accessed=2 * n * c * itemsize + num_groups * 8 * c * 4,
        ),
    )(pred, target)

    total = jnp.sum(partials)  # tiny (groups, 8, C) final reduce, done once
    if reduction == "mean":
        return total / jnp.float32(n)
    elif reduction == "sum":
        return total
    else:
        # TODO(synk): reduction='none' (per-row CE vector) needs a row-output kernel.
        raise ValueError(f"{reduction} is not a valid value for reduction here")


def _reference(pred, target, reduction="mean"):
    logp = jax.nn.log_softmax(pred.astype(jnp.float32), axis=-1)
    ce = jnp.sum(-target.astype(jnp.float32) * logp, axis=-1)
    return jnp.mean(ce) if reduction == "mean" else jnp.sum(ce)


if __name__ == "__main__":
    key = jax.random.PRNGKey(0)
    k1, k2, k3, k4, k5, k6 = jax.random.split(key, 6)

    # Case 1: small aligned shapes (single tile), f32, mean reduction.
    N, C = 16, 128
    pred = jax.random.normal(k1, (N, C), dtype=jnp.float32)
    target = jax.nn.softmax(jax.random.normal(k2, (N, C), dtype=jnp.float32), axis=-1)
    loss = soft_target_cross_entropy(pred, target)
    jax.block_until_ready(loss)
    ref = _reference(pred, target)
    assert jnp.allclose(loss, ref, rtol=1e-5, atol=1e-5), (loss, ref)

    # Case 2: ragged batch -> in-kernel masking, multi-tile accumulation.
    N2, C2 = 40, 128
    pred2 = jax.random.normal(k3, (N2, C2), dtype=jnp.float32)
    target2 = jax.nn.softmax(jax.random.normal(k4, (N2, C2), dtype=jnp.float32), axis=-1)
    loss2 = soft_target_cross_entropy(pred2, target2, max_tile_rows=16)
    jax.block_until_ready(loss2)
    ref2 = _reference(pred2, target2)
    assert jnp.allclose(loss2, ref2, rtol=1e-5, atol=1e-5), (loss2, ref2)

    # Case 3: bf16 inputs (in-kernel upcast of pred, promoted multiply), sum reduction.
    N3, C3 = 24, 128
    pred3 = jax.random.normal(k5, (N3, C3), dtype=jnp.float32).astype(jnp.bfloat16)
    target3 = jax.nn.softmax(
        jax.random.normal(k6, (N3, C3), dtype=jnp.float32), axis=-1
    ).astype(jnp.bfloat16)
    loss3 = soft_target_cross_entropy(pred3, target3, reduction="sum", max_tile_rows=8)
    jax.block_until_ready(loss3)
    ref3 = _reference(pred3, target3, reduction="sum")
    assert jnp.allclose(loss3, ref3, rtol=2e-2, atol=2e-2), (loss3, ref3)

    print("KERNEL_OK")
</pallas_src>

<mosaic_0001>
module attributes {stable_mosaic.version = 11 : i64} {
  func.func @kernel(%arg0: i32, %arg1: i32, %arg2: memref<8x128xf32, #tpu.memory_space<vmem>>, %arg3: memref<8x128xf32, #tpu.memory_space<vmem>>, %arg4: memref<1x8x128xf32, #tpu.memory_space<vmem>>) attributes {dimension_semantics = [#tpu.dimension_semantics<parallel>, #tpu.dimension_semantics<arbitrary>], iteration_bounds = array<i64: 1, 2>, scalar_prefetch = 0 : i64, scratch_operands = 0 : i64, tpu.core_type = #tpu.core_type<tc>, window_params = [{transform_indices = @transform_0, window_bounds = array<i64: 8, 128>}, {transform_indices = @transform_1, window_bounds = array<i64: 8, 128>}, {transform_indices = @transform_2, window_bounds = array<i64: 1, 8, 128>}]} {
    %c0_i32 = arith.constant 0 : i32
    %0 = arith.cmpi eq, %arg1, %c0_i32 : i32
    %1 = arith.extui %0 : i1 to i32
    %c0_i32_0 = arith.constant 0 : i32
    %2 = arith.cmpi ne, %1, %c0_i32_0 : i32
    scf.if %2 {
      %cst_13 = arith.constant 0.000000e+00 : f32
      %37 = vector.broadcast %cst_13 : f32 to vector<8x128xf32>
      %c0_14 = arith.constant 0 : index
      %c0_15 = arith.constant 0 : index
      %c0_16 = arith.constant 0 : index
      %38 = vector.load %arg4[%c0_14, %c0_15, %c0_16] : memref<1x8x128xf32, #tpu.memory_space<vmem>>, vector<1x8x128xf32>
      %39 = vector.shape_cast %38 : vector<1x8x128xf32> to vector<8x128xf32>
      %40 = vector.shape_cast %37 : vector<8x128xf32> to vector<1x8x128xf32>
      tpu.vector_store %arg4[%c0_14, %c0_15, %c0_16], %40 {strides = array<i32>} : memref<1x8x128xf32, #tpu.memory_space<vmem>>, vector<1x8x128xf32>,
    } else {
    }
    %c0 = arith.constant 0 : index
    %c0_1 = arith.constant 0 : index
    %3 = vector.load %arg2[%c0, %c0_1] : memref<8x128xf32, #tpu.memory_space<vmem>>, vector<8x128xf32>
    %c0_2 = arith.constant 0 : index
    %c0_3 = arith.constant 0 : index
    %4 = vector.load %arg3[%c0_2, %c0_3] : memref<8x128xf32, #tpu.memory_space<vmem>>, vector<8x128xf32>
    %cst = arith.constant dense<0xFF800000> : vector<8xf32>
    %5 = vector.multi_reduction <maximumf>, %3, %cst [1] : vector<8x128xf32> to vector<8xf32>
    %6 = vector.shape_cast %5 : vector<8xf32> to vector<8x1xf32>
    %7 = vector.broadcast %6 : vector<8x1xf32> to vector<8x128xf32>
    %8 = arith.subf %3, %7 : vector<8x128xf32>
    %9 = math.exp %8 : vector<8x128xf32>
    %cst_4 = arith.constant dense<0.000000e+00> : vector<8xf32>
    %10 = vector.multi_reduction <add>, %9, %cst_4 [1] : vector<8x128xf32> to vector<8xf32>
    %11 = vector.shape_cast %10 : vector<8xf32> to vector<8x1xf32>
    %12 = math.log %11 : vector<8x1xf32>
    %13 = arith.addf %6, %12 : vector<8x1xf32>
    %14 = vector.broadcast %13 : vector<8x1xf32> to vector<8x128xf32>
    %15 = arith.subf %3, %14 : vector<8x128xf32>
    %16 = arith.mulf %4, %15 : vector<8x128xf32>
    %c2_i32 = arith.constant 2 : i32
    %17 = arith.muli %arg0, %c2_i32 : i32
    %18 = arith.addi %17, %arg1 : i32
    %c8_i32 = arith.constant 8 : i32
    %19 = arith.muli %18, %c8_i32 : i32
    %20 = tpu.iota {dimensions = array<i32: 0>} : vector<8x1xi32>
    %21 = vector.broadcast %19 : i32 to vector<8x1xi32>
    %22 = arith.addi %21, %20 : vector<8x1xi32>
    %c16_i32 = arith.constant 16 : i32
    %23 = vector.broadcast %c16_i32 : i32 to vector<8x1xi32>
    %24 = arith.cmpi slt, %22, %23 : vector<8x1xi32>
    %cst_5 = arith.constant 0.000000e+00 : f32
    %25 = vector.shape_cast %24 : vector<8x1xi1> to vector<8x1xi1>
    %26 = vector.broadcast %25 : vector<8x1xi1> to vector<8x128xi1>
    %27 = vector.broadcast %cst_5 : f32 to vector<8x128xf32>
    %28 = arith.select %26, %16, %27 : vector<8x128xi1>, vector<8x128xf32>
    %c0_6 = arith.constant 0 : index
    %c0_7 = arith.constant 0 : index
    %c0_8 = arith.constant 0 : index
    %29 = vector.load %arg4[%c0_6, %c0_7, %c0_8] : memref<1x8x128xf32, #tpu.memory_space<vmem>>, vector<1x8x128xf32>
    %30 = vector.shape_cast %29 : vector<1x8x128xf32> to vector<8x128xf32>
    %31 = vector.shape_cast %28 : vector<8x128xf32> to vector<1x8x128xf32>
    %cst_9 = arith.constant dense<0.000000e+00> : vector<8x128xf32>
    %32 = vector.multi_reduction <add>, %31, %cst_9 [0] : vector<1x8x128xf32> to vector<8x128xf32>
    %33 = arith.subf %30, %32 : vector<8x128xf32>
    %c0_10 = arith.constant 0 : index
    %c0_11 = arith.constant 0 : index
    %c0_12 = arith.constant 0 : index
    %34 = vector.load %arg4[%c0_10, %c0_11, %c0_12] : memref<1x8x128xf32, #tpu.memory_space<vmem>>, vector<1x8x128xf32>
    %35 = vector.shape_cast %34 : vector<1x8x128xf32> to vector<8x128xf32>
    %36 = vector.shape_cast %33 : vector<8x128xf32> to vector<1x8x128xf32>
    tpu.vector_store %arg4[%c0_10, %c0_11, %c0_12], %36 {strides = array<i32>} : memref<1x8x128xf32, #tpu.memory_space<vmem>>, vector<1x8x128xf32>,
    return
  }
  func.func @transform_0(%arg0: i32, %arg1: i32) -> (i32, i32) {
    %c2_i32 = arith.constant 2 : i32
    %0 = arith.muli %arg0, %c2_i32 : i32
    %1 = arith.addi %0, %arg1 : i32
    %c1_i32 = arith.constant 1 : i32
    %2 = arith.minsi %1, %c1_i32 : i32
    %c0_i32 = arith.constant 0 : i32
    %c0_i32_0 = arith.constant 0 : i32
    return %2, %c0_i32 : i32, i32
  }
  func.func @transform_1(%arg0: i32, %arg1: i32) -> (i32, i32) {
    %c2_i32 = arith.constant 2 : i32
    %0 = arith.muli %arg0, %c2_i32 : i32
    %1 = arith.addi %0, %arg1 : i32
    %c1_i32 = arith.constant 1 : i32
    %2 = arith.minsi %1, %c1_i32 : i32
    %c0_i32 = arith.constant 0 : i32
    %c0_i32_0 = arith.constant 0 : i32
    return %2, %c0_i32 : i32, i32
  }
  func.func @transform_2(%arg0: i32, %arg1: i32) -> (i32, i32, i32) {
    %c0_i32 = arith.constant 0 : i32
    %c0_i32_0 = arith.constant 0 : i32
    %c0_i32_1 = arith.constant 0 : i32
    return %arg0, %c0_i32, %c0_i32_0 : i32, i32, i32
  }
}

</mosaic_0001>

<bundles_post_ra>
// kernel: tpu_custom_call.1
= control target key start
LH: loop header
LB: loop body
LE: loop exit
PB: predicated region body
PF: predicated region fallthrough
CT: control target
= control target key end

     0   :  { %7 = vsyncpa [#allocation3], 0  ;;  %s811_s0 = inlined_call_operand.hbm [shape: f32[16,128], index: 0, kind: input, shape index: {}]   ;;  %s812_s1 = inlined_call_operand.hbm [shape: f32[16,128], index: 1, kind: input, shape index: {}]   ;;  %s813_s2 = inlined_call_operand.hbm [shape: f32[1,8,128], index: 2, kind: output, shape index: {}]  }
   0x1   :  { %9 = vsyncpa [#allocation3 + $0x1], 0 }
   0x2   :  { %10 = vsyncpa [#allocation6], 0 }
   0x3   :  { %12 = vsyncpa [#allocation6 + $0x1], 0 }
   0x4   :  { %13 = vsyncpa [#allocation4], 0  ;;  %s613_s9 = smov 0   ;;  %s615_s10 = smov 0  }
   0x5   :  { %s617_s11 = smov 0   ;;  %s619_s12 = smov 0  }
   0x6   :  { %s621_s13 = smov 0   ;;  %s623_s14 = smov 0  }
   0x7 LB: > { %s360_s15 = sadd.s32 4294967295, %s592_s14   ;;  %s28_s16 = sadd.s32 1, %s588_s13  ;;  %s592_s14 = sphi %s623_s14, %s19_s14   ;;  %s588_s13 = sphi %s621_s13, %s827_s13   ;;  %s584_s12 = sphi %s619_s12, %s826_s12   ;;  %s580_s11 = sphi %s617_s11, %s825_s11   ;;  %s576_s10 = sphi %s615_s10, %s824_s10   ;;  %s572_s9 = sphi %s613_s9, %s823_s9  }
   0x8   : > { %p29_p0 = scmp.ge.s32.totalorder %s28_s16, 2  ;;  %p37_p1 = scmp.lt.s32.totalorder %s588_s13, 1 }
   0x9   : > { %s46_s17 = sadd.s32 1, %s580_s11  ;;  %p53_p2 = scmp.ne.s32.totalorder %s580_s11, %s576_s10 }
   0xa   : > { %s829_s16 = smov (%p29_p0, %s28_s16), 0  ;;  %p54_p4 = scmp.eq.s32.totalorder %s592_s14, 0 }
   0xb   : > { %s650_s18 = scalar_select %p37_p1, %s588_s13, 1 }
   0xc   : > { %p41_p3 = scmp.lt.s32.totalorder %s829_s16, 1  ;;  %p59_p5 = scmp.ne.s32.totalorder %s576_s10, %s572_s9 }
   0xd   : > { %p60_p6 = scmp.eq.s32.totalorder %s360_s15, 0  ;;  %p55_p7 = por %p54_p4, %p53_p2 }
   0xe   : > { %s42_s19 = scalar_select %p41_p3, %s829_s16, 1 }
   0xf   : > { %p658_p8 = por %p60_p6, %p59_p5  ;;  %p391_p10 = scmp.lt.s32.totalorder %s592_s14, 2 }
  0x10   : > { %s43_s21 = ssub.s32 %s650_s18, %s42_s19  ;;  %s665_s22 = sand.u32 1, %s580_s11  }
  0x11   : > { %s815_s20 = scalar_select %p658_p8, 1, 0 }
  0x12   : > { %p44_p9 = scmp.eq.s32.totalorder %s43_s21, 0  ;;  %s364_s23 = sshll.u32 %s650_s18, 7 }
  0x13   : > { %s363_s25 = sshll.u32 %s665_s22, 3  ;;  %s677_s28 = scalar_lea.hbm %s811_s0, %s364_s23 }
  0x14   : > { %s669_s24 = scalar_select %p44_p9, %s580_s11, %s46_s17  }
  0x15   : > { %s147_s29 = scalar_lea.vmem [#allocation2], %s363_s25  ;;  %p681_p11 = pnand %p391_p10, %p55_p7 }
  0x16   : > { %s158_s30 = sshll.u32 %s147_s29, 4  ;;  %s144_s4 = scalar_lea.sflag [#allocation3], %s665_s22  ;;  %s685_s30 = int_to_ptr.vmem [resolvable:$true] %s158_s30 }
  0x17   : > { %s448_s5 = scalar_lea.hbm %s677_s28, 128  ;;  %p450_p1 = pneg %p681_p11 }
  0x18   : > { %p449_p0 = scmp.ne.s32.totalorder %s677_s28, %s448_s5  ;;  %s453_s8 = scalar_lea.hbm %s811_s0, 256 }
  0x19   : > { %p454_p4 = scmp.lt.u32.totalorder %s677_s28, %s811_s0  ;;  %p455_p5 = scmp.lt.u32.totalorder %s453_s8, %s448_s5 }
  0x1a   : > { %p451_p2 = pnand %p450_p1, %p449_p0  ;;  %p457_p7 = scmp.lt.u32.totalorder %s448_s5, %s677_s28 }
  0x1b   : > { %p456_p6 = por %p455_p5, %p454_p4 }
  0x1c   : > { %p452_p3 = pneg %p451_p2 }
  0x1d   : > { %p458_p9 = por %p457_p7, %p456_p6 }
  0x1f   : > { %p459_p10 = pnand %p458_p9, %p452_p3 }
  0x21   : > { %462 = shalt.err (!%p459_p10)
}
  0x22   : > { %s463_s19 = scalar_lea.vmem %s685_s30, 128  ;;  %s594_s21 = smov [#allocation2]  }
  0x23   : > { %p464_p0 = scmp.ne.s32.totalorder %s685_s30, %s463_s19  ;;  %s468_s26 = sshll.u32 %s594_s21, 4  ;;  %s469_s26 = int_to_ptr.vmem [resolvable:$false] %s468_s26 }
  0x24   : > { %s470_s27 = scalar_lea.vmem %s469_s26, 256  ;;  %p471_p13 = scmp.lt.s32.totalorder %s685_s30, %s469_s26 }
  0x25   : > { %p466_p2 = pnand %p464_p0, %p450_p1  ;;  %p472_p4 = scmp.lt.s32.totalorder %s470_s27, %s463_s19 }
  0x27   : > { %p467_p12 = pneg %p466_p2  ;;  %p473_p5 = por %p472_p4, %p471_p13 }
  0x29   : > { %p474_p6 = pnand %p473_p5, %p467_p12 }
  0x2b   : > { %477 = shalt.err (!%p474_p6)
}
  0x2c   : > { %387 = dma.hbm_to_vmem [thread:$0]  (!%p681_p11), %s677_s28, 128, %s685_s30, %s144_s4  }
  0x2d   : > { %p817_p3 = scmp.lt.s32.totalorder %s592_s14, 3  ;;  %p818_p7 = scmp.ge.s32.totalorder %s592_s14, 1 }
  0x2e   : > { %s728_s7 = scalar_lea.hbm %s812_s1, %s364_s23  ;;  %s169_s8 = scalar_lea.vmem [#allocation5], %s363_s25 }
  0x2f   : > { %p719_p9 = pnand %p818_p7, %p817_p3  ;;  %s180_s9 = sshll.u32 %s169_s8, 4  ;;  %s181_s9 = int_to_ptr.vmem [resolvable:$true] %s180_s9 }
  0x30   : > { %s166_s28 = scalar_lea.sflag [#allocation6], %s665_s22  ;;  %s478_s30 = scalar_lea.hbm %s728_s7, 128 }
  0x31   : > { %s819_s29 = scalar_select %p719_p9, 1, 0 }
  0x32   : > { %p479_p12 = scmp.ne.s32.totalorder %s728_s7, %s478_s30  ;;  %s483_s23 = scalar_lea.hbm %s812_s1, 256 }
  0x33   : > { %p484_p0 = scmp.lt.u32.totalorder %s728_s7, %s812_s1  ;;  %p485_p2 = scmp.lt.u32.totalorder %s483_s23, %s478_s30 }
  0x34   : > { %p481_p13 = pnand %p479_p12, %p450_p1  ;;  %p487_p5 = scmp.lt.u32.totalorder %s478_s30, %s728_s7 }
  0x35   : > { %p486_p4 = por %p485_p2, %p484_p0 }
  0x36   : > { %p482_p10 = pneg %p481_p13 }
  0x37   : > { %p488_p6 = por %p487_p5, %p486_p4 }
  0x39   : > { %p489_p3 = pnand %p488_p6, %p482_p10 }
  0x3b   : > { %492 = shalt.err (!%p489_p3)
}
  0x3c   : > { %s493_s22 = scalar_lea.vmem %s181_s9, 128  ;;  %s595_s25 = smov [#allocation5]  }
  0x3d   : > { %p494_p7 = scmp.ne.s32.totalorder %s181_s9, %s493_s22  ;;  %s498_s21 = sshll.u32 %s595_s25, 4  ;;  %s499_s21 = int_to_ptr.vmem [resolvable:$false] %s498_s21 }
  0x3e   : > { %s500_s26 = scalar_lea.vmem %s499_s21, 256  ;;  %p501_p8 = scmp.lt.s32.totalorder %s181_s9, %s499_s21 }
  0x3f   : > { %p496_p12 = pnand %p494_p7, %p450_p1  ;;  %p502_p9 = scmp.lt.s32.totalorder %s500_s26, %s493_s22 }
  0x41   : > { %p497_p13 = pneg %p496_p12  ;;  %p503_p0 = por %p502_p9, %p501_p8 }
  0x43   : > { %p504_p2 = pnand %p503_p0, %p497_p13 }
  0x45   : > { %507 = shalt.err (!%p504_p2)
}
  0x46   : > { %390 = dma.hbm_to_vmem [thread:$0]  (!%p681_p11), %s728_s7, 128, %s181_s9, %s166_s28  }
  0x47   : > { %p820_p10 = scmp.ne.s32.totalorder %s819_s29, 0 }
  0x48   : > { %s191_s27 = sand.u32 (!%p820_p10), 1, %s576_s10   ;;  %p821_p1 = scmp.ne.s32.totalorder (!%p820_p10), %s815_s20, 0 }
  0x49   : > { %189 = sbr.rel (%p820_p10) target bundleno = 429 (0x1ad), region = 28  ;;  %s368_s5 = sshll.u32 (!%p820_p10), %s191_s27, 3 }
  0x4a   : > { %s192_s6 = scalar_lea.sflag (!%p820_p10), [#allocation3], %s191_s27  ;;  %s195_s8 = scalar_lea.vmem (!%p820_p10), [#allocation2], %s368_s5 }
  0x50   : > { %559 = dma.done.wait (%p821_p1), %s192_s6, 128  }
  0x51   : > { %561 = vsyncadd (%p821_p1), %s192_s6, 4294967168  ;;  %s201_s30 = scalar_lea.sflag [#allocation6], %s191_s27  ;;  %s204_s18 = scalar_lea.vmem [#allocation5], %s368_s5 }
  0x52   : > { %563 = dma.done.wait (%p821_p1), %s201_s30, 128  }
  0x53   : > { %565 = vsyncadd (%p821_p1), %s201_s30, 4294967168  ;;  %p370_p8 = scmp.ne.s32.totalorder %s584_s12, 0 }
  0x54   : > { %v596_v0 = vmov (!%p370_p8), 0.0  }
  0x55   : > { %236 = sbr.rel (%p370_p8) target bundleno = 92 (0x5c), region = 40  ;;  %237 = vst [vmem:[#allocation7] sm:$0xff] (!%p370_p8), %v596_v0 }
  0x5c PF: > { %v238_v1 = vld [vmem:[%s195_s8] sm:$0xff]  ;;  %v255_v7 = vlaneseq  ;;  %s371_s20 = sshll.u32 %s584_s12, 3  ;;  %v239_v14 = vld [vmem:[%s204_s18] sm:$0xff]  ;;  %s597_s3 = smov [#allocation7]  }
  0x5d   : > { %240 = vmax.xlane.f32.xlu0 %v238_v1  ;;  %v257_v9 = vstv %s371_s20  ;;  %v263_v17 = vld [vmem:[#allocation7] sm:$0xff]  ;;  %s276_s29 = sshll.u32 %s597_s3, 4  ;;  %p767_p11 = scmp.eq.s32.totalorder %s360_s15, 1  ;;  %s277_s29 = int_to_ptr.vmem [resolvable:$true] %s276_s29 }
  0x5e   : > { %v256_v8 = vshrl.u32 %v255_v7, 7  ;;  %s508_s12 = scalar_lea.vmem %s277_s29, 128  ;;  %p515_p6 = scmp.lt.s32.totalorder %s277_s29, %s277_s29 }
  0x5f   : > { %p509_p9 = scmp.ne.s32.totalorder %s277_s29, %s508_s12  ;;  %p516_p3 = scmp.lt.s32.totalorder %s508_s12, %s508_s12 }
  0x60   : > { %v258_v12 = vadd.s32 %v257_v9, %v256_v8 }
  0x61   : > { %p510_p4 = pnand %p509_p9, %p767_p11  ;;  %p517_p7 = por %p516_p3, %p515_p6 }
  0x62   : > { %vm259_vm0 = vcmp.lt.s32.totalorder %v258_v12, 16 }
  0x63   : > { %p511_p5 = pneg %p510_p4 }
  0x65   : > { %p518_p12 = pnand %p517_p7, %p511_p5 }
  0xea   : > { %v241_v2 = vpop.xlane.xlu0 %240 }
  0xeb   : > { %v242_v3 = vsub.f32 %v238_v1, %v241_v2 }
  0xed   : > { %v243_v4 = vmul.f32 1.442695, %v242_v3 }
  0xef   : > { %444 = vpow2.f32 %v243_v4 }
  0xf9   : > { %v445_v5 = vpop.eup %444 }
  0xfa   : > { %245 = vadd.xlane.f32.xlu0 %v445_v5 }
 0x187   : > { %v246_v6 = vpop.xlane.xlu0 %245 }
 0x188   : > { %446 = vlog2.f32 %v246_v6 }
 0x192   : > { %v447_v10 = vpop.eup %446 }
 0x193   : > { %v248_v11 = vmul.f32 0.6931472, %v447_v10 }
 0x195   : > { %v249_v13 = vadd.f32 %v248_v11, %v241_v2 }
 0x197   : > { %v250_v15 = vsub.f32 %v238_v1, %v249_v13 }
 0x199   : > { %v251_v16 = vmul.f32 %v250_v15, %v239_v14 }
 0x19b   : > { %v262_v18 = vsel %vm259_vm0, %v251_v16, 0.0 }
 0x19c   : > { %v265_v19 = vsub.f32 %v263_v17, %v262_v18 }
 0x19e   : > { %266 = vst [vmem:[#allocation7] sm:$0xff] %v265_v19 }
 0x19f   : > { %521 = shalt.err (!%p518_p12)
}
 0x1a0   : > { %s522_s15 = scalar_lea.hbm %s813_s2, 128 }
 0x1a1   : > { %p523_p13 = scmp.ne.s32.totalorder %s813_s2, %s522_s15  ;;  %p528_p10 = scmp.lt.u32.totalorder %s522_s15, %s813_s2 }
 0x1a3   : > { %p524_p0 = pnand %p523_p13, %p767_p11 }
 0x1a5   : > { %p525_p2 = pneg %p524_p0 }
 0x1a7   : > { %p530_p1 = pnand %p528_p10, %p525_p2 }
 0x1a9   : > { %533 = shalt.err (!%p530_p1)
}
 0x1aa   : > { %381 = dma.vmem_to_hbm [thread:$0]  (%p767_p11), %s277_s29, 128, %s813_s2, [#allocation4]  }
 0x1ab   : > { %567 = dma.done.wait (%p767_p11), [#allocation4], 128  }
 0x1ac   : > { %569 = vsyncadd (%p767_p11), [#allocation4], 4294967168 }
 0x1ad PF: > { %s19_s14 = sadd.s32 1, %s592_s14   ;;  %s823_s9 = smov %s576_s10 }
 0x1ae   : > { %p16_p8 = scmp.ge.s32.totalorder %s19_s14, 4   ;;  %s824_s10 = smov %s580_s11 }
 0x1af   : > { %s825_s11 = smov %s669_s24  ;;  %s826_s12 = smov %s588_s13 }
 0x1b0   : > { %s827_s13 = smov %s829_s16  ;;  %18 = sbr.rel (!%p16_p8) target bundleno = 7 (0x7), region = 83 }
 0x1b7   :  { %289 = vsyncpa [#allocation3], 1 }
 0x1b8   :  { %291 = vsyncpa [#allocation3 + $0x1], 1 }
 0x1b9   :  { %292 = vsyncpa [#allocation6], 1 }
 0x1ba   :  { %294 = vsyncpa [#allocation6 + $0x1], 1 }
 0x1bb   :  { %295 = vsyncpa [#allocation4], 1 }
 0x1bc   :  { %297 = vsyncpa [#allocation4 + $0x1], 1 }

</bundles_post_ra>
